<compile_context>
chip_gen: v6e
topology: v6e:2x2x1
jax: 0.10.0
libtpu: 0.0.40
codegen_flags: <defaults>
</compile_context>

<pallas_src>
import functools

import jax
import jax.numpy as jnp
import numpy as np
from jax.experimental import pallas as pl
from jax.experimental.pallas import tpu as pltpu

_NUM_CORE_SPLITS = 2  # v7x has 2 TensorCores; harmless elsewhere


def _king_loss_kernel(x_ref, tgt_ref, loss_ref, *, king, n_rows, tile_n,
                      tiles_per_split, inv_n, king_only, class_axis):
    # x_ref   : VMEM logits tile, (C, tile_n) if class_axis == 0 else (tile_n, C)
    # tgt_ref : VMEM int32 targets, (1, tile_n) or (tile_n, 1)
    # loss_ref: VMEM (1, 1, 1) f32 per-split partial mean (resident accumulator)
    split = pl.program_id(0)
    i = pl.program_id(1)
    last = pl.num_programs(1) - 1
    batch_axis = 1 - class_axis

    @pl.when(i == 0)
    def _():
        loss_ref[...] = jnp.zeros_like(loss_ref)

    x = x_ref[...].astype(jnp.float32)      # upcast in-kernel (bf16-friendly)
    tgt = tgt_ref[...]

    # Global batch positions of this tile (unclamped tile index), masking both
    # the padded tail of the last tile and the duplicate tile a split may get
    # when the tile count does not divide evenly across splits.
    tile_idx = split * tiles_per_split + i
    pos = (jax.lax.broadcasted_iota(jnp.int32, tgt.shape, batch_axis)
           + tile_idx * tile_n)
    valid = pos < n_rows

    # Numerically stable log-softmax pieces, reduced over the class axis.
    m = jnp.max(x, axis=class_axis, keepdims=True)
    e = jnp.exp(x - m)
    s = jnp.sum(e, axis=class_axis, keepdims=True)
    lse = m + jnp.log(s)

    # Cross-entropy per sample: lse - logits[target] (masked gather).
    cls = jax.lax.broadcasted_iota(jnp.int32, x.shape, class_axis)
    logit_t = jnp.sum(jnp.where(cls == tgt, x, 0.0),
                      axis=class_axis, keepdims=True)
    ce = lse - logit_t
    is_king = tgt == king

    if king_only:
        # epoch % 5 != 0: only samples whose target == king contribute.
        per = jnp.where(jnp.logical_and(valid, is_king), ce, 0.0)
    else:
        # epoch % 5 == 0: ce + softmax[:, king] for non-king samples.
        x_king = jax.lax.slice_in_dim(x, king, king + 1, axis=class_axis)
        sm_king = jnp.exp(x_king - lse)
        per = jnp.where(valid, ce + jnp.where(is_king, 0.0, sm_king), 0.0)

    # TODO(synk): a single running f32 scalar accrues O(num_tiles) rounding
    # error for extremely large N; pairwise partials would tighten it.
    loss_ref[...] += jnp.sum(per)

    @pl.when(i == last)
    def _():
        # Fold the mean into a compile-time constant multiply.
        loss_ref[...] = loss_ref[...] * jnp.float32(inv_n)


def _round_up(x, m):
    return -(-x // m) * m


def _vmem_capacity_bytes():
    """Per-TensorCore VMEM capacity; conservative (v7x) fallback."""
    try:
        cap = int(pltpu.get_tpu_info().vmem_capacity_bytes)
        if cap > 0:
            return cap
    except Exception:
        pass
    return 64 * 1024 * 1024


def _pick_tile_n(n, c, itemsize, batch_multiple, lane_major, budget_bytes):
    """Largest batch tile whose VMEM working set fits the budget.

    Working set per batch element:
      * 2x (double-buffered) native-dtype logits tile, padded to vreg tiles,
      * ~6 live f32 (class x batch)-shaped intermediates in the kernel body.
    """
    if lane_major:                        # logits tile is (C, tile_n)
        c_in = _round_up(c, 8 * max(1, 4 // itemsize))
        c_f32 = _round_up(c, 8)
    else:                                 # logits tile is (tile_n, C)
        c_in = c_f32 = _round_up(c, 128)
    per_row = 2 * c_in * itemsize + 6 * c_f32 * 4
    tile = max(budget_bytes // per_row, batch_multiple)
    if tile >= n:
        return n                          # single full-extent block is legal
    return max((tile // batch_multiple) * batch_multiple, batch_multiple)


def king_loss(output, target, epoch, *, king=3, beta=1, max_tile_rows=None):
    """JAX/Pallas equivalent of KingLoss(king, beta).forward(output, target, epoch).

    output: [N, C] logits (any float dtype; upcast to f32 inside the kernel)
    target: [N]    int labels
    epoch : concrete python/int scalar (branch is specialized at trace time)
    beta is unused by the reference forward pass.
    """
    del beta  # unused in the PyTorch forward
    n, c = output.shape
    itemsize = jnp.dtype(output.dtype).itemsize
    king_only = (int(epoch) % 5) != 0

    lane_major = c < 128  # lane-dense layout pays off when C is far below 128
    if lane_major:
        x_in = output.T                                  # [C, N]
        tgt_in = target.astype(jnp.int32).reshape(1, n)  # lane-major targets
        class_axis = 0
        batch_multiple = 128                             # batch on lanes
    else:
        x_in = output                                    # [N, C]
        tgt_in = target.astype(jnp.int32).reshape(n, 1)
        class_axis = 1
        batch_multiple = 32 // itemsize                  # packed sublanes

    vmem_cap = _vmem_capacity_bytes()
    tile_n = _pick_tile_n(n, c, itemsize, batch_multiple, lane_major,
                          budget_bytes=vmem_cap // 4)
    if max_tile_rows is not None and max_tile_rows < n:
        cap = max(batch_multiple,
                  (max_tile_rows // batch_multiple) * batch_multiple)
        tile_n = min(tile_n, cap)

    total_tiles = -(-n // tile_n)
    num_splits = min(_NUM_CORE_SPLITS, total_tiles)
    tiles_per_split = -(-total_tiles // num_splits)

    def batch_block_index(split, i):
        # Clamp so the (possibly) extra tile of the last split stays in range;
        # the kernel fully masks it via the unclamped global position.
        t = jnp.minimum(split * tiles_per_split + i, total_tiles - 1)
        return (0, t) if lane_major else (t, 0)

    x_block = (c, tile_n) if lane_major else (tile_n, c)
    t_block = (1, tile_n) if lane_major else (tile_n, 1)

    kernel = functools.partial(
        _king_loss_kernel, king=king, n_rows=n, tile_n=tile_n,
        tiles_per_split=tiles_per_split, inv_n=1.0 / n,
        king_only=king_only, class_axis=class_axis)

    grid_spec = pltpu.PrefetchScalarGridSpec(
        num_scalar_prefetch=0,
        grid=(num_splits, tiles_per_split),
        in_specs=[
            pl.BlockSpec(x_block, batch_block_index),   # logits tile
            pl.BlockSpec(t_block, batch_block_index),   # target tile
        ],
        # Per-split partial sums; block (1,1,1) is legal (last two dims equal
        # the full array dims) and stays resident across the reduction axis.
        out_specs=pl.BlockSpec((1, 1, 1), lambda split, i: (split, 0, 0)),
    )

    partials = pl.pallas_call(
        kernel,
        out_shape=jax.ShapeDtypeStruct((num_splits, 1, 1), jnp.float32),
        grid_spec=grid_spec,
        compiler_params=pltpu.CompilerParams(
            dimension_semantics=("parallel", "arbitrary"),
            vmem_limit_bytes=int(vmem_cap // 2),
        ),
    )(x_in, tgt_in)
    return jnp.sum(partials)


def _reference(output, target, epoch, king=3):
    # Pure-JAX reference mirroring the PyTorch code.
    out_f32 = output.astype(jnp.float32)
    logp = jax.nn.log_softmax(out_f32, axis=1)
    ce = -logp[jnp.arange(output.shape[0]), target]
    if epoch % 5 != 0:
        ce = jnp.where(target != king, 0.0, ce)
    else:
        sm = jax.nn.softmax(out_f32, axis=1)
        ce = ce + jnp.where(target != king, sm[:, king], 0.0)
    return ce.mean()


if __name__ == "__main__":
    key = jax.random.PRNGKey(0)
    KING = 3
    ok = True
    # (N, C, max_tile_rows): the module's documented [N, 10] shape; a ragged
    # batch with C >= 128 (natural-layout path); and a forced multi-tile /
    # 2-split case exercising partial-tile and clamped-tile masking.
    cases = ((8, 10, None), (12, 130, None), (300, 10, 128))
    for n, c, max_tile in cases:
        k1, k2 = jax.random.split(jax.random.fold_in(key, n * 1000 + c))
        output = jax.random.normal(k1, (n, c), dtype=jnp.float32)
        target = jax.random.randint(k2, (n,), 0, c, dtype=jnp.int32)
        for epoch in (1, 5):  # exercise both epoch % 5 branches
            got = jax.block_until_ready(
                king_loss(output, target, epoch, king=KING,
                          max_tile_rows=max_tile))
            want = _reference(output, target, epoch, king=KING)
            if not np.allclose(np.asarray(got), np.asarray(want),
                               rtol=1e-5, atol=1e-5):
                ok = False
                print(f"MISMATCH N={n} C={c} epoch={epoch}: "
                      f"kernel={got} ref={want}")
    if ok:
        print("KERNEL_OK")
</pallas_src>

<mosaic_0001>
module attributes {stable_mosaic.version = 11 : i64} {
  func.func @_king_loss_kernel(%arg0: i32, %arg1: i32, %arg2: memref<10x8xf32, #tpu.memory_space<vmem>>, %arg3: memref<1x8xi32, #tpu.memory_space<vmem>>, %arg4: memref<1x1x1xf32, #tpu.memory_space<vmem>>) attributes {dimension_semantics = [#tpu.dimension_semantics<parallel>, #tpu.dimension_semantics<arbitrary>], iteration_bounds = array<i64: 1, 1>, scalar_prefetch = 0 : i64, scratch_operands = 0 : i64, tpu.core_type = #tpu.core_type<tc>, window_params = [{transform_indices = @transform_0, window_bounds = array<i64: 10, 8>}, {transform_indices = @transform_1, window_bounds = array<i64: 1, 8>}, {transform_indices = @transform_2, window_bounds = array<i64: 1, 1, 1>}]} {
    %c0_i32 = arith.constant 0 : i32
    %0 = arith.cmpi eq, %arg1, %c0_i32 : i32
    %1 = arith.extui %0 : i1 to i32
    %c0_i32_0 = arith.constant 0 : i32
    %2 = arith.cmpi ne, %1, %c0_i32_0 : i32
    scf.if %2 {
      %cst_18 = arith.constant 0.000000e+00 : f32
      %46 = vector.broadcast %cst_18 : f32 to vector<1x1x1xf32>
      %c0_19 = arith.constant 0 : index
      %c0_20 = arith.constant 0 : index
      %c0_21 = arith.constant 0 : index
      %47 = vector.load %arg4[%c0_19, %c0_20, %c0_21] : memref<1x1x1xf32, #tpu.memory_space<vmem>>, vector<1x1x1xf32>
      tpu.vector_store %arg4[%c0_19, %c0_20, %c0_21], %46 {strides = array<i32>} : memref<1x1x1xf32, #tpu.memory_space<vmem>>, vector<1x1x1xf32>,
    } else {
    }
    %c0 = arith.constant 0 : index
    %c0_1 = arith.constant 0 : index
    %3 = vector.load %arg2[%c0, %c0_1] : memref<10x8xf32, #tpu.memory_space<vmem>>, vector<10x8xf32>
    %c0_2 = arith.constant 0 : index
    %c0_3 = arith.constant 0 : index
    %4 = vector.load %arg3[%c0_2, %c0_3] : memref<1x8xi32, #tpu.memory_space<vmem>>, vector<1x8xi32>
    %c1_i32 = arith.constant 1 : i32
    %5 = arith.muli %arg0, %c1_i32 : i32
    %6 = arith.addi %5, %arg1 : i32
    %7 = tpu.iota {dimensions = array<i32: 1>} : vector<1x8xi32>
    %c8_i32 = arith.constant 8 : i32
    %8 = arith.muli %6, %c8_i32 : i32
    %9 = vector.broadcast %8 : i32 to vector<1x8xi32>
    %10 = arith.addi %7, %9 : vector<1x8xi32>
    %c8_i32_4 = arith.constant 8 : i32
    %11 = vector.broadcast %c8_i32_4 : i32 to vector<1x8xi32>
    %12 = arith.cmpi slt, %10, %11 : vector<1x8xi32>
    %cst = arith.constant dense<0xFF800000> : vector<8xf32>
    %13 = vector.multi_reduction <maximumf>, %3, %cst [0] : vector<10x8xf32> to vector<8xf32>
    %14 = vector.shape_cast %13 : vector<8xf32> to vector<1x8xf32>
    %15 = vector.broadcast %14 : vector<1x8xf32> to vector<10x8xf32>
    %16 = arith.subf %3, %15 : vector<10x8xf32>
    %17 = math.exp %16 : vector<10x8xf32>
    %cst_5 = arith.constant dense<0.000000e+00> : vector<8xf32>
    %18 = vector.multi_reduction <add>, %17, %cst_5 [0] : vector<10x8xf32> to vector<8xf32>
    %19 = vector.shape_cast %18 : vector<8xf32> to vector<1x8xf32>
    %20 = math.log %19 : vector<1x8xf32>
    %21 = arith.addf %14, %20 : vector<1x8xf32>
    %22 = tpu.iota {dimensions = array<i32: 0>} : vector<10x8xi32>
    %23 = vector.broadcast %4 : vector<1x8xi32> to vector<10x8xi32>
    %24 = arith.cmpi eq, %22, %23 : vector<10x8xi32>
    %cst_6 = arith.constant 0.000000e+00 : f32
    %25 = vector.broadcast %cst_6 : f32 to vector<10x8xf32>
    %26 = arith.select %24, %3, %25 : vector<10x8xi1>, vector<10x8xf32>
    %cst_7 = arith.constant dense<0.000000e+00> : vector<8xf32>
    %27 = vector.multi_reduction <add>, %26, %cst_7 [0] : vector<10x8xf32> to vector<8xf32>
    %28 = vector.shape_cast %27 : vector<8xf32> to vector<1x8xf32>
    %29 = arith.subf %21, %28 : vector<1x8xf32>
    %c3_i32 = arith.constant 3 : i32
    %30 = vector.broadcast %c3_i32 : i32 to vector<1x8xi32>
    %31 = arith.cmpi eq, %4, %30 : vector<1x8xi32>
    %32 = arith.andi %12, %31 : vector<1x8xi1>
    %cst_8 = arith.constant 0.000000e+00 : f32
    %33 = vector.broadcast %cst_8 : f32 to vector<1x8xf32>
    %34 = arith.select %32, %29, %33 : vector<1x8xi1>, vector<1x8xf32>
    %c0_9 = arith.constant 0 : index
    %c0_10 = arith.constant 0 : index
    %c0_11 = arith.constant 0 : index
    %35 = vector.load %arg4[%c0_9, %c0_10, %c0_11] : memref<1x1x1xf32, #tpu.memory_space<vmem>>, vector<1x1x1xf32>
    %36 = vector.shape_cast %34 : vector<1x8xf32> to vector<1x1x8xf32>
    %cst_12 = arith.constant dense<0.000000e+00> : vector<1xf32>
    %37 = vector.multi_reduction <add>, %36, %cst_12 [1, 2] : vector<1x1x8xf32> to vector<1xf32>
    %38 = vector.shape_cast %37 : vector<1xf32> to vector<1x1x1xf32>
    %39 = vector.extract %38[0, 0, 0] : f32 from vector<1x1x1xf32>
    %40 = vector.broadcast %39 : f32 to vector<1x1x1xf32>
    %41 = arith.addf %35, %40 : vector<1x1x1xf32>
    %c0_13 = arith.constant 0 : index
    %c0_14 = arith.constant 0 : index
    %c0_15 = arith.constant 0 : index
    %42 = vector.load %arg4[%c0_13, %c0_14, %c0_15] : memref<1x1x1xf32, #tpu.memory_space<vmem>>, vector<1x1x1xf32>
    tpu.vector_store %arg4[%c0_13, %c0_14, %c0_15], %41 {strides = array<i32>} : memref<1x1x1xf32, #tpu.memory_space<vmem>>, vector<1x1x1xf32>,
    %c0_i32_16 = arith.constant 0 : i32
    %43 = arith.cmpi eq, %arg1, %c0_i32_16 : i32
    %44 = arith.extui %43 : i1 to i32
    %c0_i32_17 = arith.constant 0 : i32
    %45 = arith.cmpi ne, %44, %c0_i32_17 : i32
    scf.if %45 {
      %c0_18 = arith.constant 0 : index
      %c0_19 = arith.constant 0 : index
      %c0_20 = arith.constant 0 : index
      %46 = vector.load %arg4[%c0_18, %c0_19, %c0_20] : memref<1x1x1xf32, #tpu.memory_space<vmem>>, vector<1x1x1xf32>
      %cst_21 = arith.constant 1.250000e-01 : f32
      %47 = vector.broadcast %cst_21 : f32 to vector<1x1x1xf32>
      %48 = arith.mulf %46, %47 : vector<1x1x1xf32>
      %c0_22 = arith.constant 0 : index
      %c0_23 = arith.constant 0 : index
      %c0_24 = arith.constant 0 : index
      %49 = vector.load %arg4[%c0_22, %c0_23, %c0_24] : memref<1x1x1xf32, #tpu.memory_space<vmem>>, vector<1x1x1xf32>
      tpu.vector_store %arg4[%c0_22, %c0_23, %c0_24], %48 {strides = array<i32>} : memref<1x1x1xf32, #tpu.memory_space<vmem>>, vector<1x1x1xf32>,
    } else {
    }
    return
  }
  func.func @transform_0(%arg0: i32, %arg1: i32) -> (i32, i32) {
    %c1_i32 = arith.constant 1 : i32
    %0 = arith.muli %arg0, %c1_i32 : i32
    %1 = arith.addi %0, %arg1 : i32
    %c0_i32 = arith.constant 0 : i32
    %2 = arith.minsi %1, %c0_i32 : i32
    %c0_i32_0 = arith.constant 0 : i32
    %c0_i32_1 = arith.constant 0 : i32
    return %c0_i32_0, %2 : i32, i32
  }
  func.func @transform_1(%arg0: i32, %arg1: i32) -> (i32, i32) {
    %c1_i32 = arith.constant 1 : i32
    %0 = arith.muli %arg0, %c1_i32 : i32
    %1 = arith.addi %0, %arg1 : i32
    %c0_i32 = arith.constant 0 : i32
    %2 = arith.minsi %1, %c0_i32 : i32
    %c0_i32_0 = arith.constant 0 : i32
    %c0_i32_1 = arith.constant 0 : i32
    return %c0_i32_0, %2 : i32, i32
  }
  func.func @transform_2(%arg0: i32, %arg1: i32) -> (i32, i32, i32) {
    %c0_i32 = arith.constant 0 : i32
    %c0_i32_0 = arith.constant 0 : i32
    %c0_i32_1 = arith.constant 0 : i32
    return %arg0, %c0_i32, %c0_i32_0 : i32, i32, i32
  }
}

</mosaic_0001>

<bundles_post_ra>
// kernel: tpu_custom_call.1
= control target key start
LH: loop header
LB: loop body
LE: loop exit
PB: predicated region body
PF: predicated region fallthrough
CT: control target
= control target key end

     0   :  { %vm79_vm0 = vcmask 64512   ;;  %vm81_vm1 = vcmask 58368   ;;  %s247_s0 = inlined_call_operand.vmem [shape: f32[10,8], index: 0, kind: input, shape index: {}]   ;;  %s248_s1 = inlined_call_operand.vmem [shape: s32[1,8], index: 1, kind: input, shape index: {}]   ;;  %s249_s2 = inlined_call_operand.hbm [shape: f32[1,1,1], index: 2, kind: output, shape index: {}]  }
   0x1   :  { %v69_v0 = vld [vmem:[%s247_s0] sm:$0xff]  ;;  %v70_v1 = vld [vmem:[%s247_s0 + $0x8] sm:$0x3] }
   0x2   :  { %v80_v2 = vsel %vm79_vm0, %v69_v0, -inf }
   0x3   :  { %7 = vsyncpa [#allocation3], 0  ;;  %v82_v3 = vsel %vm81_vm1, %v70_v1, -inf  ;;  %v73_v11 = vlaneseq  ;;  %v71_v18 = vld [vmem:[%s248_s1] sm:$0x1]  ;;  %vm133_vm7 = vcmask 57344  }
   0x4   :  { %v83_v4 = vmax.f32 %v80_v2, %v82_v3  ;;  %vm129_vm5 = vcmp.eq.s32.totalorder %v71_v18, 3  ;;  %vm67_vm8 = vcmask 0   ;;  %v209_v50 = vmov 0.0   ;;  %s210_s14 = smov [#allocation2]  }
   0x5   :  { %v109_v16 = vshrl.u32 %v73_v11, 7  ;;  %v74_v41 = vand.u32 127, %v73_v11  ;;  %68 = vst.msk [vmem:[#allocation2] sm:$0x1] %vm67_vm8, %v209_v50  ;;  %s160_s15 = sshll.u32 %s210_s14, 4  ;;  %s161_s15 = int_to_ptr.vmem [resolvable:$true] %s160_s15 }
   0x6   :  { %v84_v5 = vrot.slane %v83_v4, 4  ;;  %s187_s16 = scalar_lea.vmem %s161_s15, 16  ;;  %s191_s17 = scalar_lea.vmem %s161_s15, 32 }
   0x7   :  { %v113_v17 = vsub.s32 0, %v109_v16  ;;  %v110_v19 = vadd.s32 8, %v109_v16  ;;  %vm78_vm4 = vcmp.lt.s32.totalorder %v74_v41, 8  ;;  %p188_p0 = scmp.ne.s32.totalorder %s161_s15, %s187_s16  ;;  %p192_p1 = scmp.lt.s32.totalorder %s161_s15, %s161_s15 }
   0x8   :  { %v85_v6 = vmax.f32 %v83_v4, %v84_v5  ;;  %vm130_vm6 = vmand %vm78_vm4, %vm129_vm5  ;;  %p193_p2 = scmp.lt.s32.totalorder %s191_s17, %s187_s16 }
   0x9   :  { %v114_v20 = vrot.slane %v71_v18, %v113_v17 }
   0xa   :  { %v86_v7 = vrot.slane %v85_v6, 2  ;;  %p194_p3 = por %p193_p2, %p192_p1 }
   0xb   :  { %vm115_vm2 = vcmp.eq.s32.totalorder %v109_v16, %v114_v20  ;;  %vm116_vm3 = vcmp.eq.s32.totalorder %v110_v19, %v114_v20 }
   0xc   :  { %v87_v8 = vmax.f32 %v85_v6, %v86_v7  ;;  %v117_v24 = vsel %vm115_vm2, %v69_v0, 0.0  ;;  %v118_v25 = vsel %vm116_vm3, %v70_v1, 0.0  ;;  %v132_v58 = vld [vmem:[#allocation2] sm:$0x1]  ;;  %p195_p4 = pnand %p194_p3, %p188_p0 }
   0xd   :  { %v119_v28 = vsel %vm79_vm0, %v117_v24, 0.0  ;;  %v120_v29 = vsel %vm81_vm1, %v118_v25, 0.0 }
   0xe   :  { %v88_v9 = vrot.slane %v87_v8, 1  ;;  %v121_v32 = vadd.f32 %v120_v29, %v119_v28 }
  0x10   :  { %v89_v10 = vmax.f32 %v87_v8, %v88_v9  ;;  %v122_v35 = vrot.slane %v121_v32, 4 }
  0x12   :  { %v90_v12 = vsub.f32 %v69_v0, %v89_v10  ;;  %v91_v13 = vsub.f32 %v70_v1, %v89_v10  ;;  %v123_v38 = vadd.f32 %v122_v35, %v121_v32 }
  0x14   :  { %v92_v14 = vmul.f32 1.442695, %v90_v12  ;;  %v94_v15 = vmul.f32 1.442695, %v91_v13  ;;  %v124_v39 = vrot.slane %v123_v38, 2 }
  0x16   :  { %181 = vpow2.f32 %v92_v14  ;;  %v125_v40 = vadd.f32 %v124_v39, %v123_v38 }
  0x17   :  { %183 = vpow2.f32 %v94_v15 }
  0x18   :  { %v126_v42 = vrot.slane %v125_v40, 1 }
  0x1a   :  { %v127_v45 = vadd.f32 %v126_v42, %v125_v40 }
  0x23   :  { %v182_v21 = vpop.eup %181 }
  0x24   :  { %v184_v22 = vpop.eup %183  ;;  %v96_v23 = vsel %vm79_vm0, %v182_v21, 0.0 }
  0x25   :  { %v97_v26 = vsel %vm81_vm1, %v184_v22, 0.0 }
  0x26   :  { %v98_v27 = vadd.f32 %v97_v26, %v96_v23 }
  0x28   :  { %v99_v30 = vrot.slane %v98_v27, 4 }
  0x2a   :  { %v100_v31 = vadd.f32 %v99_v30, %v98_v27 }
  0x2c   :  { %v101_v33 = vrot.slane %v100_v31, 2 }
  0x2e   :  { %v102_v34 = vadd.f32 %v101_v33, %v100_v31 }
  0x30   :  { %v103_v36 = vrot.slane %v102_v34, 1 }
  0x32   :  { %v104_v37 = vadd.f32 %v103_v36, %v102_v34 }
  0x34   :  { %185 = vlog2.f32 %v104_v37 }
  0x41   :  { %v186_v43 = vpop.eup %185 }
  0x42   :  { %v106_v44 = vmul.f32 0.6931472, %v186_v43 }
  0x44   :  { %v107_v46 = vadd.f32 %v106_v44, %v89_v10 }
  0x46   :  { %v128_v47 = vsub.f32 %v107_v46, %v127_v45 }
  0x48   :  { %v131_v48 = vsel %vm130_vm6, %v128_v47, 0.0 }
  0x49   :  { %v134_v49 = vsel %vm133_vm7, %v131_v48, 0.0 }
  0x4a   :  { %135 = vadd.xlane.f32.xlu0 %v134_v49 }
  0xd3   :  { %v136_v51 = vpop.xlane.xlu0 %135 }
  0xd4   :  { %v137_v52 = vrot.slane %v136_v51, 4 }
  0xd6   :  { %v138_v53 = vadd.f32 %v137_v52, %v136_v51 }
  0xd8   :  { %v139_v54 = vrot.slane %v138_v53, 2 }
  0xda   :  { %v140_v55 = vadd.f32 %v139_v54, %v138_v53 }
  0xdc   :  { %v141_v56 = vrot.slane %v140_v55, 1 }
  0xde   :  { %v142_v57 = vadd.f32 %v141_v56, %v140_v55 }
  0xe0   :  { %177 = vpush %v142_v57 }
 0x111   :  { %s178_s1 = spop %177 }
 0x112   :  { %v144_v59 = vstv %s178_s1 }
 0x113   :  { %v145_v60 = vadd.f32 %v144_v59, %v132_v58 }
 0x115   :  { %147 = vst.msk [vmem:[#allocation2] sm:$0x1] %vm67_vm8, %v145_v60 }
 0x11c   :  { %v151_v61 = vld [vmem:[#allocation2] sm:$0x1] }
 0x11d   :  { %v152_v62 = vmul.f32 0.125, %v151_v61 }
 0x11f   :  { %153 = vst.msk [vmem:[#allocation2] sm:$0x1] %vm67_vm8, %v152_v62 }
 0x120   :  { %198 = shalt.err (!%p195_p4)
}
 0x121   :  { %163 = dma.vmem_to_hbm [thread:$0]  %s161_s15, 16, %s249_s2, [#allocation3]  }
 0x122   :  { %207 = dma.done.wait [#allocation3], 16  }
 0x123   :  { %208 = vsyncadd [#allocation3], 4294967280 }
 0x124   :  { %167 = vsyncpa [#allocation3], 1 }

</bundles_post_ra>
